<compile_context>
chip_gen: v6e
topology: v6e:2x2x1
jax: 0.10.0
libtpu: 0.0.40
codegen_flags: <defaults>
</compile_context>

<pallas_src>
import functools

import jax
import jax.numpy as jnp
from jax.experimental import pallas as pl
from jax.experimental.pallas import tpu as pltpu


def _total_loss_kernel(fake_ref, real_ref, ramp_ref, wn_ref, wp_ref, hn_ref,
                       hp_ref, out_ref, *, width):
    f = fake_ref[...].astype(jnp.float32)          # (TB, L) lane-dense block
    r = real_ref[...].astype(jnp.float32)
    length = f.shape[-1]                           # L = H * W (static)

    # ---- L1 partial: sum |fake - real| over this block ----------------------
    abs_sum = jnp.sum(jnp.abs(f - r))

    # ---- Detect pltpu.roll's rotate direction (tiny, per block) -------------
    # ramp holds 0..L-1 in every row.  After a roll by L-1 the partner of
    # position 0 is either 1 (rolled[p] = x[p+1]) or L-1 (rolled[p] = x[p-1]).
    ramp = ramp_ref[...]                           # (8, L) float32
    probe = pltpu.roll(ramp, shift=length - 1, axis=1)
    partner_of_zero = jnp.max(jnp.where(ramp == 0.0, probe, -1.0))
    pairs_with_next = partner_of_zero < 1.5

    w_mask = jnp.where(pairs_with_next, wn_ref[...], wp_ref[...])   # (1, L)
    h_mask = jnp.where(pairs_with_next, hn_ref[...], hp_ref[...])   # (1, L)

    # ---- TV partials on fake only: roll + mask, fused square+sum ------------
    f_w = pltpu.roll(f, shift=length - 1, axis=1)       # lane neighbour
    dw = f_w - f
    w_tv = jnp.sum(dw * dw * w_mask)

    f_h = pltpu.roll(f, shift=length - width, axis=1)   # neighbour one image row away
    dh = f_h - f
    h_tv = jnp.sum(dh * dh * h_mask)

    # ---- Per-block partial sums into one lane-dense (8, 128) tile -----------
    row = jax.lax.broadcasted_iota(jnp.int32, (8, 128), 0)
    vals = jnp.where(row == 0, abs_sum,
           jnp.where(row == 1, h_tv,
           jnp.where(row == 2, w_tv, 0.0)))
    out_ref[...] = vals[None, :, :]


def total_loss(fake_imgs, real_imgs, tv_loss_rate=1e-5, tv_loss_weight=1.0):
    assert fake_imgs.shape == real_imgs.shape
    n, c, h, w = fake_imgs.shape
    rows = n * c
    length = h * w

    # Lane-dense layout: one (image, channel) plane per row, full H*W on lanes.
    fake2d = fake_imgs.reshape(rows, length)
    real2d = real_imgs.reshape(rows, length)

    # Row tile: multiple of 8 sublanes, ~1 MiB of f32 per input block.
    target_block_bytes = 1 << 20
    tb = max(8, (target_block_bytes // (length * 4)) // 8 * 8)
    tb = min(tb, 1024)
    tb = min(tb, ((rows + 7) // 8) * 8)
    num_blocks = pl.cdiv(rows, tb)
    rows_pad = num_blocks * tb
    if rows_pad != rows:
        # Zero rows contribute exactly 0 to all three partial sums.
        pad = ((0, rows_pad - rows), (0, 0))
        fake2d = jnp.pad(fake2d, pad)
        real2d = jnp.pad(real2d, pad)

    # Index ramp + masks, computed once in the wrapper (keeps int %/// out of
    # the kernel).  "next" masks pair position p with p+1 / p+W, "prev" masks
    # pair p with p-1 / p-W; the kernel picks whichever matches roll's
    # direction.  Both choices yield exactly the PyTorch TV sums.
    lane = jnp.arange(length, dtype=jnp.int32)
    ramp = jnp.broadcast_to(lane.astype(jnp.float32), (8, length))
    w_next = ((lane % w) != (w - 1)).astype(jnp.float32)[None, :]
    w_prev = ((lane % w) != 0).astype(jnp.float32)[None, :]
    h_next = (lane < (length - w)).astype(jnp.float32)[None, :]
    h_prev = (lane >= w).astype(jnp.float32)[None, :]

    const_spec = pl.BlockSpec((1, length), lambda b: (0, 0))
    partials = pl.pallas_call(
        functools.partial(_total_loss_kernel, width=w),
        out_shape=jax.ShapeDtypeStruct((num_blocks, 8, 128), jnp.float32),
        grid_spec=pltpu.PrefetchScalarGridSpec(
            num_scalar_prefetch=0,
            grid=(num_blocks,),
            in_specs=[
                pl.BlockSpec((tb, length), lambda b: (b, 0)),
                pl.BlockSpec((tb, length), lambda b: (b, 0)),
                pl.BlockSpec((8, length), lambda b: (0, 0)),
                const_spec, const_spec, const_spec, const_spec,
            ],
            out_specs=pl.BlockSpec((1, 8, 128), lambda b: (b, 0, 0)),
        ),
        compiler_params=pltpu.CompilerParams(
            dimension_semantics=("parallel",),        # independent blocks
            vmem_limit_bytes=32 * 1024 * 1024,
        ),
    )(fake2d, real2d, ramp, w_next, w_prev, h_next, h_prev)

    abs_sum = jnp.sum(partials[:, 0, 0])
    h_tv = jnp.sum(partials[:, 1, 0])
    w_tv = jnp.sum(partials[:, 2, 0])

    # Scalar glue (matches the PyTorch module; like the original, the TV term
    # is undefined for H == 1 or W == 1).
    l1_loss = abs_sum / jnp.float32(n * c * h * w)
    count_h = jnp.float32(c * (h - 1) * w)
    count_w = jnp.float32(c * h * (w - 1))
    tv_loss = tv_loss_weight * 2.0 * (h_tv / count_h + w_tv / count_w) / jnp.float32(n)
    return l1_loss + jnp.float32(tv_loss_rate) * tv_loss


def _reference(fake, real, tv_loss_rate=1e-5):
    n, c, h, w = fake.shape
    l1 = jnp.mean(jnp.abs(fake - real))
    h_tv = jnp.sum((fake[:, :, 1:, :] - fake[:, :, :-1, :]) ** 2)
    w_tv = jnp.sum((fake[:, :, :, 1:] - fake[:, :, :, :-1]) ** 2)
    tv = 2.0 * (h_tv / (c * (h - 1) * w) + w_tv / (c * h * (w - 1))) / n
    return l1 + tv_loss_rate * tv


if __name__ == "__main__":
    key = jax.random.PRNGKey(0)
    k1, k2 = jax.random.split(key)
    # Small shapes consistent with the module's NCHW image inputs.
    fake_imgs = jax.random.uniform(k1, (2, 4, 16, 16), dtype=jnp.float32)
    real_imgs = jax.random.uniform(k2, (2, 4, 16, 16), dtype=jnp.float32)

    out = total_loss(fake_imgs, real_imgs)
    out = jax.block_until_ready(out)

    ref = _reference(fake_imgs, real_imgs)
    assert jnp.allclose(out, ref, rtol=3e-5, atol=1e-6), (out, ref)

    print("KERNEL_OK")
</pallas_src>

<mosaic_0001>
module attributes {stable_mosaic.version = 11 : i64} {
  func.func @_total_loss_kernel(%arg0: i32, %arg1: memref<8x256xf32, #tpu.memory_space<vmem>>, %arg2: memref<8x256xf32, #tpu.memory_space<vmem>>, %arg3: memref<8x256xf32, #tpu.memory_space<vmem>>, %arg4: memref<1x256xf32, #tpu.memory_space<vmem>>, %arg5: memref<1x256xf32, #tpu.memory_space<vmem>>, %arg6: memref<1x256xf32, #tpu.memory_space<vmem>>, %arg7: memref<1x256xf32, #tpu.memory_space<vmem>>, %arg8: memref<1x8x128xf32, #tpu.memory_space<vmem>>) attributes {dimension_semantics = [#tpu.dimension_semantics<parallel>], iteration_bounds = array<i64: 1>, scalar_prefetch = 0 : i64, scratch_operands = 0 : i64, tpu.core_type = #tpu.core_type<tc>, window_params = [{transform_indices = @transform_0, window_bounds = array<i64: 8, 256>}, {transform_indices = @transform_1, window_bounds = array<i64: 8, 256>}, {pipeline_mode = #tpu.pipeline_mode<synchronous>, transform_indices = @transform_2, window_bounds = array<i64: 8, 256>}, {pipeline_mode = #tpu.pipeline_mode<synchronous>, transform_indices = @transform_3, window_bounds = array<i64: 1, 256>}, {pipeline_mode = #tpu.pipeline_mode<synchronous>, transform_indices = @transform_4, window_bounds = array<i64: 1, 256>}, {pipeline_mode = #tpu.pipeline_mode<synchronous>, transform_indices = @transform_5, window_bounds = array<i64: 1, 256>}, {pipeline_mode = #tpu.pipeline_mode<synchronous>, transform_indices = @transform_6, window_bounds = array<i64: 1, 256>}, {transform_indices = @transform_7, window_bounds = array<i64: 1, 8, 128>}]} {
    %c0 = arith.constant 0 : index
    %c0_0 = arith.constant 0 : index
    %0 = vector.load %arg1[%c0, %c0_0] : memref<8x256xf32, #tpu.memory_space<vmem>>, vector<8x256xf32>
    %c0_1 = arith.constant 0 : index
    %c0_2 = arith.constant 0 : index
    %1 = vector.load %arg2[%c0_1, %c0_2] : memref<8x256xf32, #tpu.memory_space<vmem>>, vector<8x256xf32>
    %2 = arith.subf %0, %1 : vector<8x256xf32>
    %3 = math.absf %2 : vector<8x256xf32>
    %4 = vector.shape_cast %3 : vector<8x256xf32> to vector<1x8x256xf32>
    %cst = arith.constant dense<0.000000e+00> : vector<1xf32>
    %5 = vector.multi_reduction <add>, %4, %cst [1, 2] : vector<1x8x256xf32> to vector<1xf32>
    %6 = vector.shape_cast %5 : vector<1xf32> to vector<1x1x1xf32>
    %7 = vector.extract %6[0, 0, 0] : f32 from vector<1x1x1xf32>
    %c0_3 = arith.constant 0 : index
    %c0_4 = arith.constant 0 : index
    %8 = vector.load %arg3[%c0_3, %c0_4] : memref<8x256xf32, #tpu.memory_space<vmem>>, vector<8x256xf32>
    %c255_i32 = arith.constant 255 : i32
    %9 = tpu.dynamic_rotate %8 by %c255_i32 dim 1 : vector<8x256xf32>, i32 -> vector<8x256xf32>
    %cst_5 = arith.constant 0.000000e+00 : f32
    %10 = vector.broadcast %cst_5 : f32 to vector<8x256xf32>
    %11 = arith.cmpf oeq, %8, %10 : vector<8x256xf32>
    %cst_6 = arith.constant -1.000000e+00 : f32
    %12 = vector.broadcast %cst_6 : f32 to vector<8x256xf32>
    %13 = arith.select %11, %9, %12 : vector<8x256xi1>, vector<8x256xf32>
    %14 = vector.shape_cast %13 : vector<8x256xf32> to vector<1x8x256xf32>
    %cst_7 = arith.constant dense<0xFF800000> : vector<1xf32>
    %15 = vector.multi_reduction <maximumf>, %14, %cst_7 [1, 2] : vector<1x8x256xf32> to vector<1xf32>
    %16 = vector.shape_cast %15 : vector<1xf32> to vector<1x1x1xf32>
    %17 = vector.extract %16[0, 0, 0] : f32 from vector<1x1x1xf32>
    %cst_8 = arith.constant 1.500000e+00 : f32
    %18 = arith.cmpf olt, %17, %cst_8 : f32
    %c0_9 = arith.constant 0 : index
    %c0_10 = arith.constant 0 : index
    %19 = vector.load %arg4[%c0_9, %c0_10] : memref<1x256xf32, #tpu.memory_space<vmem>>, vector<1x256xf32>
    %c0_11 = arith.constant 0 : index
    %c0_12 = arith.constant 0 : index
    %20 = vector.load %arg5[%c0_11, %c0_12] : memref<1x256xf32, #tpu.memory_space<vmem>>, vector<1x256xf32>
    %21 = arith.select %18, %19, %20 : vector<1x256xf32>
    %c0_13 = arith.constant 0 : index
    %c0_14 = arith.constant 0 : index
    %22 = vector.load %arg6[%c0_13, %c0_14] : memref<1x256xf32, #tpu.memory_space<vmem>>, vector<1x256xf32>
    %c0_15 = arith.constant 0 : index
    %c0_16 = arith.constant 0 : index
    %23 = vector.load %arg7[%c0_15, %c0_16] : memref<1x256xf32, #tpu.memory_space<vmem>>, vector<1x256xf32>
    %24 = arith.select %18, %22, %23 : vector<1x256xf32>
    %c255_i32_17 = arith.constant 255 : i32
    %25 = tpu.dynamic_rotate %0 by %c255_i32_17 dim 1 : vector<8x256xf32>, i32 -> vector<8x256xf32>
    %26 = arith.subf %25, %0 : vector<8x256xf32>
    %27 = arith.mulf %26, %26 : vector<8x256xf32>
    %28 = vector.broadcast %21 : vector<1x256xf32> to vector<8x256xf32>
    %29 = arith.mulf %27, %28 : vector<8x256xf32>
    %30 = vector.shape_cast %29 : vector<8x256xf32> to vector<1x8x256xf32>
    %cst_18 = arith.constant dense<0.000000e+00> : vector<1xf32>
    %31 = vector.multi_reduction <add>, %30, %cst_18 [1, 2] : vector<1x8x256xf32> to vector<1xf32>
    %32 = vector.shape_cast %31 : vector<1xf32> to vector<1x1x1xf32>
    %33 = vector.extract %32[0, 0, 0] : f32 from vector<1x1x1xf32>
    %c240_i32 = arith.constant 240 : i32
    %34 = tpu.dynamic_rotate %0 by %c240_i32 dim 1 : vector<8x256xf32>, i32 -> vector<8x256xf32>
    %35 = arith.subf %34, %0 : vector<8x256xf32>
    %36 = arith.mulf %35, %35 : vector<8x256xf32>
    %37 = vector.broadcast %24 : vector<1x256xf32> to vector<8x256xf32>
    %38 = arith.mulf %36, %37 : vector<8x256xf32>
    %39 = vector.shape_cast %38 : vector<8x256xf32> to vector<1x8x256xf32>
    %cst_19 = arith.constant dense<0.000000e+00> : vector<1xf32>
    %40 = vector.multi_reduction <add>, %39, %cst_19 [1, 2] : vector<1x8x256xf32> to vector<1xf32>
    %41 = vector.shape_cast %40 : vector<1xf32> to vector<1x1x1xf32>
    %42 = vector.extract %41[0, 0, 0] : f32 from vector<1x1x1xf32>
    %43 = tpu.iota {dimensions = array<i32: 0>} : vector<8x128xi32>
    %c0_i32 = arith.constant 0 : i32
    %44 = vector.broadcast %c0_i32 : i32 to vector<8x128xi32>
    %45 = arith.cmpi eq, %43, %44 : vector<8x128xi32>
    %c1_i32 = arith.constant 1 : i32
    %46 = vector.broadcast %c1_i32 : i32 to vector<8x128xi32>
    %47 = arith.cmpi eq, %43, %46 : vector<8x128xi32>
    %c2_i32 = arith.constant 2 : i32
    %48 = vector.broadcast %c2_i32 : i32 to vector<8x128xi32>
    %49 = arith.cmpi eq, %43, %48 : vector<8x128xi32>
    %cst_20 = arith.constant 0.000000e+00 : f32
    %50 = vector.broadcast %33 : f32 to vector<8x128xf32>
    %51 = vector.broadcast %cst_20 : f32 to vector<8x128xf32>
    %52 = arith.select %49, %50, %51 : vector<8x128xi1>, vector<8x128xf32>
    %53 = vector.broadcast %42 : f32 to vector<8x128xf32>
    %54 = arith.select %47, %53, %52 : vector<8x128xi1>, vector<8x128xf32>
    %55 = vector.broadcast %7 : f32 to vector<8x128xf32>
    %56 = arith.select %45, %55, %54 : vector<8x128xi1>, vector<8x128xf32>
    %57 = vector.shape_cast %56 : vector<8x128xf32> to vector<1x8x128xf32>
    %c0_21 = arith.constant 0 : index
    %c0_22 = arith.constant 0 : index
    %c0_23 = arith.constant 0 : index
    %58 = vector.load %arg8[%c0_21, %c0_22, %c0_23] : memref<1x8x128xf32, #tpu.memory_space<vmem>>, vector<1x8x128xf32>
    tpu.vector_store %arg8[%c0_21, %c0_22, %c0_23], %57 {strides = array<i32>} : memref<1x8x128xf32, #tpu.memory_space<vmem>>, vector<1x8x128xf32>,
    return
  }
  func.func @transform_0(%arg0: i32) -> (i32, i32) {
    %c0_i32 = arith.constant 0 : i32
    %c0_i32_0 = arith.constant 0 : i32
    return %arg0, %c0_i32 : i32, i32
  }
  func.func @transform_1(%arg0: i32) -> (i32, i32) {
    %c0_i32 = arith.constant 0 : i32
    %c0_i32_0 = arith.constant 0 : i32
    return %arg0, %c0_i32 : i32, i32
  }
  func.func @transform_2(%arg0: i32) -> (i32, i32) {
    %c0_i32 = arith.constant 0 : i32
    %c0_i32_0 = arith.constant 0 : i32
    %c0_i32_1 = arith.constant 0 : i32
    return %c0_i32, %c0_i32_0 : i32, i32
  }
  func.func @transform_3(%arg0: i32) -> (i32, i32) {
    %c0_i32 = arith.constant 0 : i32
    %c0_i32_0 = arith.constant 0 : i32
    %c0_i32_1 = arith.constant 0 : i32
    return %c0_i32, %c0_i32_0 : i32, i32
  }
  func.func @transform_4(%arg0: i32) -> (i32, i32) {
    %c0_i32 = arith.constant 0 : i32
    %c0_i32_0 = arith.constant 0 : i32
    %c0_i32_1 = arith.constant 0 : i32
    return %c0_i32, %c0_i32_0 : i32, i32
  }
  func.func @transform_5(%arg0: i32) -> (i32, i32) {
    %c0_i32 = arith.constant 0 : i32
    %c0_i32_0 = arith.constant 0 : i32
    %c0_i32_1 = arith.constant 0 : i32
    return %c0_i32, %c0_i32_0 : i32, i32
  }
  func.func @transform_6(%arg0: i32) -> (i32, i32) {
    %c0_i32 = arith.constant 0 : i32
    %c0_i32_0 = arith.constant 0 : i32
    %c0_i32_1 = arith.constant 0 : i32
    return %c0_i32, %c0_i32_0 : i32, i32
  }
  func.func @transform_7(%arg0: i32) -> (i32, i32, i32) {
    %c0_i32 = arith.constant 0 : i32
    %c0_i32_0 = arith.constant 0 : i32
    %c0_i32_1 = arith.constant 0 : i32
    return %arg0, %c0_i32, %c0_i32_0 : i32, i32, i32
  }
}

</mosaic_0001>

<bundles_post_ra>
// kernel: tpu_custom_call.1
= control target key start
LH: loop header
LB: loop body
LE: loop exit
PB: predicated region body
PF: predicated region fallthrough
CT: control target
= control target key end

     0   :  { %12 = vsyncpa [#allocation3], 0  ;;  %s401_s0 = inlined_call_operand.hbm [shape: f32[8,256], index: 0, kind: input, shape index: {}]   ;;  %s402_s1 = inlined_call_operand.hbm [shape: f32[8,256], index: 1, kind: input, shape index: {}]   ;;  %s403_s2 = inlined_call_operand.hbm [shape: f32[8,256], index: 2, kind: input, shape index: {}]   ;;  %s404_s3 = inlined_call_operand.vmem [shape: f32[1,256], index: 3, kind: input, shape index: {}]   ;;  %s405_s4 = inlined_call_operand.vmem [shape: f32[1,256], index: 4, kind: input, shape index: {}]   ;;  %s406_s5 = inlined_call_operand.vmem [shape: f32[1,256], index: 5, kind: input, shape index: {}]   ;;  %s407_s6 = inlined_call_operand.vmem [shape: f32[1,256], index: 6, kind: input, shape index: {}]   ;;  %s408_s7 = inlined_call_operand.hbm [shape: f32[1,8,128], index: 7, kind: output, shape index: {}]  }
   0x1   :  { %13 = vsyncpa [#allocation6], 0 }
   0x2   :  { %14 = vsyncpa [#allocation4], 0  ;;  %s310_s24 = smov [#allocation5]   ;;  %s311_s26 = smov [#allocation2]  }
   0x3   :  { %s31_s25 = sshll.u32 %s310_s24, 4  ;;  %s21_s27 = sshll.u32 %s311_s26, 4  ;;  %s32_s25 = int_to_ptr.vmem [resolvable:$true] %s31_s25  ;;  %s22_s27 = int_to_ptr.vmem [resolvable:$true] %s21_s27 }
   0x4   :  { %s232_s28 = scalar_lea.vmem %s32_s25, 256  ;;  %p237_p1 = scmp.lt.s32.totalorder %s32_s25, %s32_s25 }
   0x5   :  { %p233_p0 = scmp.ne.s32.totalorder %s32_s25, %s232_s28  ;;  %p238_p2 = scmp.lt.s32.totalorder %s232_s28, %s232_s28 }
   0x7   :  { %p239_p3 = por %p238_p2, %p237_p1 }
   0x9   :  { %p240_p4 = pnand %p239_p3, %p233_p0 }
   0xb   :  { %243 = shalt.err (!%p240_p4)
}
   0xc   :  { %34 = dma.hbm_to_vmem [thread:$0]  %s402_s1, 256, %s32_s25, [#allocation6]  }
   0xd   :  { %s252_s8 = scalar_lea.vmem %s22_s27, 256  ;;  %p257_p6 = scmp.lt.s32.totalorder %s22_s27, %s22_s27 }
   0xe   :  { %p253_p5 = scmp.ne.s32.totalorder %s22_s27, %s252_s8  ;;  %p258_p7 = scmp.lt.s32.totalorder %s252_s8, %s252_s8 }
  0x10   :  { %p259_p8 = por %p258_p7, %p257_p6 }
  0x12   :  { %p260_p9 = pnand %p259_p8, %p253_p5 }
  0x14   :  { %263 = shalt.err (!%p260_p9)
}
  0x15   :  { %24 = dma.hbm_to_vmem [thread:$0]  %s401_s0, 256, %s22_s27, [#allocation3]  }
  0x16   :  { %s312_s11 = smov [#allocation7]  }
  0x17   :  { %s41_s12 = sshll.u32 %s312_s11, 4  ;;  %s42_s12 = int_to_ptr.vmem [resolvable:$true] %s41_s12 }
  0x18   :  { %s272_s13 = scalar_lea.vmem %s42_s12, 256  ;;  %p277_p11 = scmp.lt.s32.totalorder %s42_s12, %s42_s12 }
  0x19   :  { %p273_p10 = scmp.ne.s32.totalorder %s42_s12, %s272_s13  ;;  %p278_p12 = scmp.lt.s32.totalorder %s272_s13, %s272_s13 }
  0x1b   :  { %p279_p13 = por %p278_p12, %p277_p11 }
  0x1d   :  { %p280_p0 = pnand %p279_p13, %p273_p10 }
  0x1f   :  { %283 = shalt.err (!%p280_p0)
}
  0x20   :  { %44 = dma.hbm_to_vmem [thread:$0]  %s403_s2, 256, %s42_s12, [#allocation6]  }
  0x21   :  { %304 = dma.done.wait [#allocation3], 256  }
  0x22   :  { %305 = vsyncadd [#allocation3], 4294967040 }
  0x23   :  { %306 = dma.done.wait [#allocation6], 512  }
  0x24   :  { %307 = vsyncadd [#allocation6], 4294966784  ;;  %v80_v0 = vld [vmem:[#allocation7] sm:$0xff]  ;;  %s313_s0 = smov 127   ;;  %v63_v2 = vld [vmem:[#allocation2 + $0x8] sm:$0xff]  ;;  %s314_s2 = smov 112   ;;  %v86_v11 = vlaneseq }
  0x25   :  { %v365_v1 = vld [vmem:[#allocation2] sm:$0xff]  ;;  %82 = vrot.lane.b32.xlu0 %v80_v0, %s313_s0  ;;  %v64_v3 = vld [vmem:[#allocation5] sm:$0xff]  ;;  %v65_v4 = vld [vmem:[#allocation5 + $0x8] sm:$0xff]  ;;  %vm91_vm1 = vcmp.eq.f32.partialorder %v80_v0, 0.0 }
  0x26   :  { %v81_v5 = vld [vmem:[#allocation7 + $0x8] sm:$0xff]  ;;  %v66_v6 = vsub.f32 %v365_v1, %v64_v3  ;;  %v67_v7 = vsub.f32 %v63_v2, %v65_v4  ;;  %v87_v12 = vand.u32 127, %v86_v11  ;;  %v374_v40 = vshrl.u32 %v86_v11, 7  ;;  %v106_v47 = vld [vmem:[%s404_s3] sm:$0x3] }
  0x27   :  { %vm92_vm2 = vcmp.eq.f32.partialorder %v81_v5, 0.0  ;;  %v107_v48 = vld [vmem:[%s405_s4] sm:$0x3]  ;;  %s315_s4 = smov [#allocation8]  }
  0x28   :  { %v68_v8 = vand.u32 2147483647, %v66_v6  ;;  %v69_v9 = vand.u32 2147483647, %v67_v7  ;;  %vm88_vm0 = vcmp.lt.s32.totalorder %v87_v12, 127  ;;  %vm152_vm3 = vcmp.lt.s32.totalorder %v87_v12, 112 }
  0x29   :  { %84 = vrot.lane.b32.xlu0 %v81_v5, %s313_s0  ;;  %v112_v49 = vld [vmem:[%s406_s5] sm:$0x3]  ;;  %v128_v51 = vsub.s32 0, %v374_v40  ;;  %v132_v52 = vsub.s32 1, %v374_v40  ;;  %vm186_vm5 = vcmp.eq.s32.totalorder %v374_v40, 2  ;;  %vm185_vm6 = vcmp.eq.s32.totalorder %v374_v40, 1 }
  0x2a   :  { %v70_v10 = vadd.f32 %v69_v9, %v68_v8  ;;  %v113_v50 = vld [vmem:[%s407_s6] sm:$0x3]  ;;  %s200_s5 = sshll.u32 %s315_s4, 4  ;;  %vm184_vm7 = vcmp.eq.s32.totalorder %v374_v40, 0  ;;  %s201_s5 = int_to_ptr.vmem [resolvable:$true] %s200_s5 }
  0x2b   :  { %s284_s26 = scalar_lea.vmem %s201_s5, 128  ;;  %p289_p3 = scmp.lt.s32.totalorder %s201_s5, %s201_s5 }
  0x2c   :  { %71 = vadd.xlane.f32.xlu1 %v70_v10  ;;  %p285_p2 = scmp.ne.s32.totalorder %s201_s5, %s284_s26  ;;  %p290_p4 = scmp.lt.s32.totalorder %s284_s26, %s284_s26 }
  0x2d   :  { %115 = vrot.lane.b32.xlu0 %v365_v1, %s313_s0 }
  0x2e   :  { %p291_p5 = por %p290_p4, %p289_p3 }
  0x30   :  { %p292_p6 = pnand %p291_p5, %p285_p2 }
  0x31   :  { %148 = vrot.lane.b32.xlu0 %v365_v1, %s314_s2 }
  0x35   :  { %150 = vrot.lane.b32.xlu0 %v63_v2, %s314_s2 }
  0x97   :  { %v83_v13 = vpop.permute.xlu0 %82 }
  0x9b   :  { %v85_v14 = vpop.permute.xlu0 %84 }
  0x9c   :  { %v89_v15 = vsel %vm88_vm0, %v83_v13, %v85_v14  ;;  %v90_v16 = vsel %vm88_vm0, %v85_v14, %v83_v13 }
  0x9d   :  { %v93_v17 = vsel %vm91_vm1, %v89_v15, -1.0  ;;  %v94_v18 = vsel %vm92_vm2, %v90_v16, -1.0 }
  0x9e   :  { %v95_v19 = vmax.f32 %v93_v17, %v94_v18 }
  0x9f   :  { %v116_v34 = vpop.permute.xlu0 %115 }
  0xa0   :  { %96 = vmax.xlane.f32.xlu1 %v95_v19 }
  0xa3   :  { %v149_v35 = vpop.permute.xlu0 %148 }
  0xa7   :  { %v151_v36 = vpop.permute.xlu0 %150 }
  0xa8   :  { %v153_v38 = vsel %vm152_vm3, %v149_v35, %v151_v36  ;;  %v154_v39 = vsel %vm152_vm3, %v151_v36, %v149_v35 }
  0xa9   :  { %v155_v43 = vsub.f32 %v153_v38, %v365_v1  ;;  %v156_v44 = vsub.f32 %v154_v39, %v63_v2 }
  0xab   :  { %v157_v54 = vmul.f32 %v155_v43, %v155_v43  ;;  %v158_v55 = vmul.f32 %v156_v44, %v156_v44 }
  0xb1   :  { %117 = vrot.lane.b32.xlu1 %v63_v2, %s313_s0 }
  0xb5   :  { %v72_v20 = vpop.xlane.xlu1 %71 }
  0xb6   :  { %v73_v21 = vrot.slane %v72_v20, 4 }
  0xb8   :  { %v74_v22 = vadd.f32 %v73_v21, %v72_v20 }
  0xba   :  { %v75_v23 = vrot.slane %v74_v22, 2 }
  0xbc   :  { %v76_v24 = vadd.f32 %v75_v23, %v74_v22 }
  0xbe   :  { %v77_v25 = vrot.slane %v76_v24, 1 }
  0xc0   :  { %v78_v26 = vadd.f32 %v77_v25, %v76_v24 }
  0xc2   :  { %210 = vpush %v78_v26 }
  0xf3   :  { %s372_s15 = spop %210 }
  0xf4   :  { %v191_v23 = vstv %s372_s15 }
 0x129   :  { %v97_v27 = vpop.xlane.xlu1 %96 }
 0x12a   :  { %v98_v28 = vrot.slane %v97_v27, 4 }
 0x12c   :  { %v99_v29 = vmax.f32 %v97_v27, %v98_v28 }
 0x12d   :  { %v118_v37 = vpop.permute.xlu1 %117 }
 0x12e   :  { %v100_v30 = vrot.slane %v99_v29, 2  ;;  %v119_v41 = vsel %vm88_vm0, %v116_v34, %v118_v37  ;;  %v120_v42 = vsel %vm88_vm0, %v118_v37, %v116_v34 }
 0x12f   :  { %v121_v45 = vsub.f32 %v119_v41, %v365_v1  ;;  %v122_v46 = vsub.f32 %v120_v42, %v63_v2 }
 0x130   :  { %v101_v31 = vmax.f32 %v99_v29, %v100_v30 }
 0x131   :  { %v123_v56 = vmul.f32 %v121_v45, %v121_v45  ;;  %v124_v57 = vmul.f32 %v122_v46, %v122_v46 }
 0x132   :  { %v102_v32 = vrot.slane %v101_v31, 1 }
 0x134   :  { %v103_v33 = vmax.f32 %v101_v31, %v102_v32 }
 0x136   :  { %212 = vpush %v103_v33 }
 0x167   :  { %s213_s16 = spop %212 }
 0x168   :  { %p105_p1 = scmp.lt.f32.partialorder %s213_s16, 1.5 }
 0x16a   :  { %s108_s21 = scalar_select %p105_p1, 1, 0 }
 0x16c   :  { %v109_v53 = vstv %s108_s21 }
 0x16d   :  { %vm110_vm4 = vcmp.eq.s32.totalorder %v109_v53, 1 }
 0x16e   :  { %v111_v58 = vsel %vm110_vm4, %v106_v47, %v107_v48  ;;  %v114_v59 = vsel %vm110_vm4, %v112_v49, %v113_v50 }
 0x16f   :  { %v129_v60 = vrot.slane %v111_v58, %v128_v51  ;;  %v133_v61 = vrot.slane %v111_v58, %v132_v52  ;;  %v163_v62 = vrot.slane %v114_v59, %v128_v51  ;;  %v167_v63 = vrot.slane %v114_v59, %v132_v52 }
 0x171   :  { %v170_v0 = vmul.f32 %v163_v62, %v157_v54  ;;  %v171_v1 = vmul.f32 %v167_v63, %v158_v55  ;;  %v136_v2 = vmul.f32 %v129_v60, %v123_v56  ;;  %v137_v3 = vmul.f32 %v133_v61, %v124_v57 }
 0x173   :  { %v172_v4 = vadd.f32 %v171_v1, %v170_v0  ;;  %v138_v5 = vadd.f32 %v137_v3, %v136_v2 }
 0x175   :  { %173 = vadd.xlane.f32.xlu1 %v172_v4  ;;  %139 = vadd.xlane.f32.xlu0 %v138_v5 }
 0x1fe   :  { %v140_v6 = vpop.xlane.xlu0 %139  ;;  %v174_v7 = vpop.xlane.xlu1 %173 }
 0x1ff   :  { %v141_v8 = vrot.slane %v140_v6, 4  ;;  %v175_v9 = vrot.slane %v174_v7, 4 }
 0x201   :  { %v142_v10 = vadd.f32 %v141_v8, %v140_v6  ;;  %v176_v11 = vadd.f32 %v175_v9, %v174_v7 }
 0x203   :  { %v143_v12 = vrot.slane %v142_v10, 2  ;;  %v177_v13 = vrot.slane %v176_v11, 2 }
 0x205   :  { %v144_v14 = vadd.f32 %v143_v12, %v142_v10  ;;  %v178_v15 = vadd.f32 %v177_v13, %v176_v11 }
 0x207   :  { %v145_v16 = vrot.slane %v144_v14, 1  ;;  %v179_v17 = vrot.slane %v178_v15, 1 }
 0x209   :  { %v146_v18 = vadd.f32 %v145_v16, %v144_v14  ;;  %v180_v19 = vadd.f32 %v179_v17, %v178_v15 }
 0x20b   :  { %214 = vpush %v146_v18 }
 0x20c   :  { %216 = vpush %v180_v19 }
 0x23c   :  { %s215_s3 = spop %214 }
 0x23d   :  { %v187_v20 = vstv %s215_s3  ;;  %s217_s6 = spop %216 }
 0x23e   :  { %v188_v21 = vsel %vm186_vm5, %v187_v20, 0.0  ;;  %v189_v22 = vstv %s217_s6 }
 0x23f   :  { %v190_v24 = vsel %vm185_vm6, %v189_v22, %v188_v21 }
 0x240   :  { %v192_v25 = vsel %vm184_vm7, %v191_v23, %v190_v24 }
 0x241   :  { %193 = vst [vmem:[#allocation8] sm:$0xff] %v192_v25 }
 0x242   :  { %295 = shalt.err (!%p292_p6)
}
 0x243   :  { %203 = dma.vmem_to_hbm [thread:$0]  %s201_s5, 128, %s408_s7, [#allocation4]  }
 0x244   :  { %308 = dma.done.wait [#allocation4], 128  }
 0x245   :  { %309 = vsyncadd [#allocation4], 4294967168 }
 0x246   :  { %207 = vsyncpa [#allocation3], 1 }
 0x247   :  { %208 = vsyncpa [#allocation6], 1 }
 0x248   :  { %209 = vsyncpa [#allocation4], 1 }

</bundles_post_ra>
